<compile_context>
chip_gen: v7x
topology: tpu7x:2x2x1
jax: 0.10.0
libtpu: 0.0.40
codegen_flags: <defaults>
</compile_context>

<pallas_src>
import jax
import jax.numpy as jnp
from jax.experimental import pallas as pl
from jax.experimental.pallas import tpu as pltpu

KH = 5  # conv kernel height, fixed by the module (kernel_size=(5, E), padding=(2, 0))


def _round_up(x, m):
    return ((x + m - 1) // m) * m


def _default_b_tile(batch):
    """Words per grid step.

    Big batches: 128-row MXU passes (fills a pass on v5e, grid >= 2 keeps both
    v7x TensorCores busy).  Small batches: two grid steps so the v7x megacore
    split has work.  Tiny batches: a single grid step.
    """
    b8 = _round_up(max(batch, 1), 8)
    if b8 >= 256:
        return 128
    if b8 >= 16:
        return _round_up(b8 // 2, 8)
    return b8


def char_encoder_rnn_kernel(im2col_ref, xh_ref, h_ref,
                            conv_w_ref, conv_b_ref,
                            w_fused_ref, b_fused_ref,
                            h_out_ref):
    b_tile, H = h_ref.shape
    two_h = xh_ref.shape[1]
    L = im2col_ref.shape[0] // b_tile

    # ---- Conv2d(1, C, (5, E), padding=(2, 0)) as ONE fused im2col matmul ----
    # conv weight is zero-padded to 2H columns (real channels at lanes (H-C):H).
    conv = jnp.dot(im2col_ref[...], conv_w_ref[...],
                   preferred_element_type=jnp.float32)                   # (b*L, 2H) f32
    # F.max_pool2d over the L char positions; conv bias added AFTER the max
    # (per-channel constant commutes with max -> L x fewer adds).  Non-char
    # lanes stay exactly zero (zero weight columns, zero bias lanes).
    char_rep = jnp.max(conv.reshape(b_tile, L, two_h), axis=1) + conv_b_ref[...]

    # ---- Fused GRU: single gate matmul ----
    # LHS = [word_emb | char_rep | h] built with one add (char lanes of xh are 0).
    lhs = xh_ref[...] + char_rep.astype(jnp.bfloat16)                    # (b, 2H) bf16
    # W_fused columns: [r | z | n_ih | n_hh]; b_fused = [b_r_sum | b_z_sum | b_in | b_hn].
    g = jnp.dot(lhs, w_fused_ref[...],
                preferred_element_type=jnp.float32) + b_fused_ref[...]   # (b, 4H) f32

    r = jax.nn.sigmoid(g[:, 0:H])
    z = jax.nn.sigmoid(g[:, H:2 * H])
    n = jnp.tanh(g[:, 2 * H:3 * H] + r * g[:, 3 * H:4 * H])
    # GRU output == new hidden for a single step.
    h_out_ref[...] = (1.0 - z) * n + z * h_ref[...]
    # TODO(synk): lane-dense (b/4, 4H=128) output repack skipped -- the in-kernel
    # (b, H) -> (b/4, 4H) relayout risks an unsupported Mosaic reshape and the
    # (b, 32)-lane store is negligible at these sizes.


def _prepare_kernel_weights(params):
    """Fuse/transpose weights into the MXU-friendly kernel layout."""
    kh, E, C = params["conv_w"].shape
    H = params["w_hh"].shape[-1]

    # Conv weight (KH*E, C) zero-padded to (KH*E, 2H); real columns at (H-C):H.
    conv_w = jnp.zeros((kh * E, 2 * H), jnp.float32)
    conv_w = conv_w.at[:, H - C:H].set(params["conv_w"].reshape(kh * E, C))
    conv_b = jnp.zeros((1, 2 * H), jnp.float32)
    conv_b = conv_b.at[0, H - C:H].set(params["conv_b"].reshape(C))

    # Fused GRU weight (2H, 4H): rows [input-side | hidden-side],
    # columns [r | z | n_ih | n_hh].  n_ih / n_hh MUST stay separate.
    w_ih, w_hh = params["w_ih"], params["w_hh"]          # (3, H, H), gate order r|z|n
    zeros_hh = jnp.zeros((H, H), jnp.float32)
    top = jnp.concatenate([w_ih[0], w_ih[1], w_ih[2], zeros_hh], axis=1)   # (H, 4H)
    bot = jnp.concatenate([w_hh[0], w_hh[1], zeros_hh, w_hh[2]], axis=1)   # (H, 4H)
    w_fused = jnp.concatenate([top, bot], axis=0)                          # (2H, 4H)

    # Pre-summed r/z biases; n biases kept separate for the r * (...) term.
    b_ih, b_hh = params["b_ih"], params["b_hh"]          # (3, H)
    b_fused = jnp.concatenate(
        [b_ih[0] + b_hh[0], b_ih[1] + b_hh[1], b_ih[2], b_hh[2]]).reshape(1, 4 * H)

    return {
        "conv_w": conv_w.astype(jnp.bfloat16),           # (KH*E, 2H)
        "conv_b": conv_b,                                # (1, 2H) f32
        "w_fused": w_fused.astype(jnp.bfloat16),         # (2H, 4H)
        "b_fused": b_fused.astype(jnp.float32),          # (1, 4H)
    }


def _embed_inputs(params, word_inputs, char_inputs, hidden_f32):
    """Embedding gathers + [word_emb | 0 | h] slab + im2col slab (XLA glue)."""
    B, L = char_inputs.shape
    H = hidden_f32.shape[-1]
    C = params["conv_w"].shape[-1]
    word_emb = params["word_embedding"][word_inputs].astype(jnp.bfloat16)   # (B, H-C)
    xh = jnp.concatenate(
        [word_emb, jnp.zeros((B, C), jnp.bfloat16), hidden_f32.astype(jnp.bfloat16)],
        axis=-1)                                                            # (B, 2H) bf16
    char_emb = params["char_embedding"][char_inputs]                        # (B, L, E)
    char_pad = jnp.pad(char_emb, ((0, 0), (KH // 2, KH // 2), (0, 0)))      # (B, L+4, E)
    im2col = jnp.concatenate([char_pad[:, k:k + L, :] for k in range(KH)],
                             axis=-1)                                       # (B, L, KH*E)
    # TODO(synk): for large B*L, build the 5 shifted views in-kernel from the
    # padded char embedding instead of materializing the 5x-sized im2col slab
    # in HBM (it only matters once the kernel becomes HBM-bandwidth bound).
    return xh, im2col.astype(jnp.bfloat16)


def char_encoder_rnn_forward_batched(params, word_inputs, char_inputs, hidden,
                                     *, b_tile=None):
    """word_inputs: (B,) int32; char_inputs: (B, L) int32; hidden: (B, H) f32.

    Returns (output, new_hidden), both (B, H) -- identical values for a 1-step GRU.
    """
    B, L = char_inputs.shape
    H = hidden.shape[-1]
    KHE = KH * params["char_embedding"].shape[-1]

    hidden = hidden.astype(jnp.float32)
    xh, im2col = _embed_inputs(params, word_inputs, char_inputs, hidden)
    kw = _prepare_kernel_weights(params)

    if b_tile is None:
        b_tile = _default_b_tile(B)
    B_pad = _round_up(B, b_tile)
    pad_b = B_pad - B
    xh = jnp.pad(xh, ((0, pad_b), (0, 0)))
    im2col = jnp.pad(im2col, ((0, pad_b), (0, 0), (0, 0))).reshape(B_pad * L, KHE)
    h0 = jnp.pad(hidden, ((0, pad_b), (0, 0)))

    const = lambda i: (0, 0)      # weights: same block every grid step -> VMEM-resident
    batched = lambda i: (i, 0)    # per-word-tile blocks

    h_new = pl.pallas_call(
        char_encoder_rnn_kernel,
        out_shape=jax.ShapeDtypeStruct((B_pad, H), jnp.float32),
        grid=(B_pad // b_tile,),
        in_specs=[
            pl.BlockSpec((b_tile * L, KHE), batched),     # im2col char slab (bf16)
            pl.BlockSpec((b_tile, 2 * H), batched),       # [word_emb | 0 | h] (bf16)
            pl.BlockSpec((b_tile, H), batched),           # hidden state (f32)
            pl.BlockSpec((KHE, 2 * H), const),            # padded conv weight (bf16)
            pl.BlockSpec((1, 2 * H), const),              # padded conv bias (f32)
            pl.BlockSpec((2 * H, 4 * H), const),          # fused GRU weight (bf16)
            pl.BlockSpec((1, 4 * H), const),              # fused GRU bias (f32)
        ],
        out_specs=pl.BlockSpec((b_tile, H), batched),
        compiler_params=pltpu.CompilerParams(
            dimension_semantics=("parallel",)),           # v7x: shard batch over 2 TCs
    )(im2col, xh, h0, kw["conv_w"], kw["conv_b"], kw["w_fused"], kw["b_fused"])

    h_new = h_new[:B]
    return h_new, h_new


def char_encoder_rnn_forward(params, word_input, char_input, hidden):
    """Original module interface: scalar word id, (L,) char ids, (1, 1, H) hidden."""
    H = hidden.shape[-1]
    out, h_new = char_encoder_rnn_forward_batched(
        params,
        jnp.asarray(word_input, jnp.int32).reshape(1),
        jnp.asarray(char_input, jnp.int32).reshape(1, -1),
        hidden.reshape(1, H))
    return out.reshape(1, 1, H), h_new.reshape(1, 1, H)


def reference_forward_fused(params, word_inputs, char_inputs, hidden):
    """Pure-JAX (XLA) reference of the kernel's exact fused bf16 math."""
    H = hidden.shape[-1]
    hidden = hidden.astype(jnp.float32)
    xh, im2col = _embed_inputs(params, word_inputs, char_inputs, hidden)
    kw = _prepare_kernel_weights(params)
    conv = jnp.einsum("blk,kc->blc", im2col, kw["conv_w"],
                      preferred_element_type=jnp.float32)
    char_rep = jnp.max(conv, axis=1) + kw["conv_b"]
    lhs = xh + char_rep.astype(jnp.bfloat16)
    g = jnp.dot(lhs, kw["w_fused"], preferred_element_type=jnp.float32) + kw["b_fused"]
    r = jax.nn.sigmoid(g[:, 0:H])
    z = jax.nn.sigmoid(g[:, H:2 * H])
    n = jnp.tanh(g[:, 2 * H:3 * H] + r * g[:, 3 * H:4 * H])
    h_new = (1.0 - z) * n + z * hidden
    return h_new, h_new


def reference_forward_f32(params, word_inputs, char_inputs, hidden):
    """Plain f32, un-fused reference matching the PyTorch module math."""
    B, L = char_inputs.shape
    C = params["conv_w"].shape[-1]
    word_emb = params["word_embedding"][word_inputs]                        # (B, H-C)
    char_emb = params["char_embedding"][char_inputs]                        # (B, L, E)
    char_pad = jnp.pad(char_emb, ((0, 0), (KH // 2, KH // 2), (0, 0)))
    windows = jnp.stack([char_pad[:, k:k + L, :] for k in range(KH)], axis=2)  # (B,L,KH,E)
    conv = jnp.einsum("blke,kec->blc", windows, params["conv_w"]) \
        + params["conv_b"].reshape(1, 1, C)
    char_rep = jnp.max(conv, axis=1)                                        # (B, C)
    x = jnp.concatenate([word_emb, char_rep], axis=-1)                      # (B, H)
    h = hidden.astype(jnp.float32)
    w_ih, w_hh, b_ih, b_hh = (params["w_ih"], params["w_hh"],
                              params["b_ih"], params["b_hh"])
    r = jax.nn.sigmoid(x @ w_ih[0] + b_ih[0] + h @ w_hh[0] + b_hh[0])
    z = jax.nn.sigmoid(x @ w_ih[1] + b_ih[1] + h @ w_hh[1] + b_hh[1])
    n = jnp.tanh(x @ w_ih[2] + b_ih[2] + r * (h @ w_hh[2] + b_hh[2]))
    h_new = (1.0 - z) * n + z * h
    return h_new, h_new


def init_params(key, n_words, hidden_size, n_chars,
                char_embedding_size, char_representation_size):
    H, C, E = hidden_size, char_representation_size, char_embedding_size
    ks = jax.random.split(key, 8)
    return {
        # nn.Embedding(n_words, H - C)
        "word_embedding": jax.random.normal(ks[0], (n_words, H - C), jnp.float32),
        # nn.Embedding(n_chars, E)
        "char_embedding": jax.random.normal(ks[1], (n_chars, E), jnp.float32),
        # nn.Conv2d(1, C, kernel=(5, E)) weight (C,1,5,E) stored as (5, E, C)
        "conv_w": 0.1 * jax.random.normal(ks[2], (KH, E, C), jnp.float32),
        "conv_b": 0.1 * jax.random.normal(ks[3], (1, C), jnp.float32),
        # nn.GRU(H, H): weight_ih/hh (3H, H) stored transposed per gate (3, H, H), order r|z|n
        "w_ih": 0.1 * jax.random.normal(ks[4], (3, H, H), jnp.float32),
        "w_hh": 0.1 * jax.random.normal(ks[5], (3, H, H), jnp.float32),
        "b_ih": 0.1 * jax.random.normal(ks[6], (3, H), jnp.float32),
        "b_hh": 0.1 * jax.random.normal(ks[7], (3, H), jnp.float32),
    }


if __name__ == "__main__":
    n_words, n_chars = 50, 30
    hidden_size = 32              # H
    char_embedding_size = 16      # E
    char_representation_size = 8  # C
    L = 8                         # characters per word
    B = 32                        # word batch (auto: 2 grid steps of 16 words)

    key = jax.random.PRNGKey(0)
    pkey, wkey, ckey, hkey = jax.random.split(key, 4)
    params = init_params(pkey, n_words, hidden_size, n_chars,
                         char_embedding_size, char_representation_size)

    word_inputs = jax.random.randint(wkey, (B,), 0, n_words, dtype=jnp.int32)
    char_inputs = jax.random.randint(ckey, (B, L), 0, n_chars, dtype=jnp.int32)
    hidden = 0.1 * jax.random.normal(hkey, (B, hidden_size), jnp.float32)

    fwd = jax.jit(char_encoder_rnn_forward_batched)
    out, h_new = fwd(params, word_inputs, char_inputs, hidden)
    jax.block_until_ready((out, h_new))

    # Tight check vs an XLA reference of the same fused bf16 math.
    out_ref, h_ref = reference_forward_fused(params, word_inputs, char_inputs, hidden)
    assert out.shape == (B, hidden_size) and h_new.shape == (B, hidden_size)
    assert jnp.allclose(out, out_ref, atol=2e-3), "batched output mismatch vs fused ref"
    assert jnp.allclose(h_new, h_ref, atol=2e-3), "batched hidden mismatch vs fused ref"

    # Looser check vs the plain f32, un-fused PyTorch-equivalent math
    # (difference is only bf16 weight/activation rounding on the MXU path).
    out_f32, _ = reference_forward_f32(params, word_inputs, char_inputs, hidden)
    assert jnp.allclose(out, out_f32, atol=1e-1), "batched output drifted vs f32 ref"

    # Original single-word module interface (initHidden() == zeros(1, 1, H)).
    hidden0 = jnp.zeros((1, 1, hidden_size), jnp.float32)
    out1, h1 = char_encoder_rnn_forward(params, word_inputs[0], char_inputs[0], hidden0)
    out1_ref, _ = reference_forward_fused(params, word_inputs[:1], char_inputs[:1],
                                          jnp.zeros((1, hidden_size), jnp.float32))
    assert out1.shape == (1, 1, hidden_size) and h1.shape == (1, 1, hidden_size)
    assert jnp.allclose(out1.reshape(1, -1), out1_ref, atol=2e-3), "single-word mismatch"

    print("KERNEL_OK")
</pallas_src>

<mosaic_0001>
module attributes {stable_mosaic.version = 11 : i64} {
  func.func @char_encoder_rnn_kernel(%arg0: i32, %arg1: memref<128x80xbf16, #tpu.memory_space<vmem>>, %arg2: memref<16x64xbf16, #tpu.memory_space<vmem>>, %arg3: memref<16x32xf32, #tpu.memory_space<vmem>>, %arg4: memref<80x64xbf16, #tpu.memory_space<vmem>>, %arg5: memref<1x64xf32, #tpu.memory_space<vmem>>, %arg6: memref<64x128xbf16, #tpu.memory_space<vmem>>, %arg7: memref<1x128xf32, #tpu.memory_space<vmem>>, %arg8: memref<16x32xf32, #tpu.memory_space<vmem>>) attributes {dimension_semantics = [#tpu.dimension_semantics<parallel>], iteration_bounds = array<i64: 2>, scalar_prefetch = 0 : i64, scratch_operands = 0 : i64, tpu.core_type = #tpu.core_type<tc>, window_params = [{transform_indices = @transform_0, window_bounds = array<i64: 128, 80>}, {transform_indices = @transform_1, window_bounds = array<i64: 16, 64>}, {transform_indices = @transform_2, window_bounds = array<i64: 16, 32>}, {pipeline_mode = #tpu.pipeline_mode<synchronous>, transform_indices = @transform_3, window_bounds = array<i64: 80, 64>}, {pipeline_mode = #tpu.pipeline_mode<synchronous>, transform_indices = @transform_4, window_bounds = array<i64: 1, 64>}, {pipeline_mode = #tpu.pipeline_mode<synchronous>, transform_indices = @transform_5, window_bounds = array<i64: 64, 128>}, {pipeline_mode = #tpu.pipeline_mode<synchronous>, transform_indices = @transform_6, window_bounds = array<i64: 1, 128>}, {transform_indices = @transform_7, window_bounds = array<i64: 16, 32>}]} {
    %c0 = arith.constant 0 : index
    %c0_0 = arith.constant 0 : index
    %0 = vector.load %arg1[%c0, %c0_0] : memref<128x80xbf16, #tpu.memory_space<vmem>>, vector<128x80xbf16>
    %c0_1 = arith.constant 0 : index
    %c0_2 = arith.constant 0 : index
    %1 = vector.load %arg4[%c0_1, %c0_2] : memref<80x64xbf16, #tpu.memory_space<vmem>>, vector<80x64xbf16>
    %cst = arith.constant dense<0.000000e+00> : vector<128x64xf32>
    %2 = tpu.matmul %0, %1, %cst {dimension_numbers = #tpu.dot_dimension_numbers<[1], [0], [0], [1], [0, 0, 1, 1], [], []>} : vector<128x80xbf16>, vector<80x64xbf16>, vector<128x64xf32> -> vector<128x64xf32>
    %3 = vector.shape_cast %2 : vector<128x64xf32> to vector<16x8x64xf32>
    %cst_3 = arith.constant dense<0xFF800000> : vector<16x64xf32>
    %4 = vector.multi_reduction <maximumf>, %3, %cst_3 [1] : vector<16x8x64xf32> to vector<16x64xf32>
    %c0_4 = arith.constant 0 : index
    %c0_5 = arith.constant 0 : index
    %5 = vector.load %arg5[%c0_4, %c0_5] : memref<1x64xf32, #tpu.memory_space<vmem>>, vector<1x64xf32>
    %6 = vector.broadcast %5 : vector<1x64xf32> to vector<16x64xf32>
    %7 = arith.addf %4, %6 : vector<16x64xf32>
    %c0_6 = arith.constant 0 : index
    %c0_7 = arith.constant 0 : index
    %8 = vector.load %arg2[%c0_6, %c0_7] : memref<16x64xbf16, #tpu.memory_space<vmem>>, vector<16x64xbf16>
    %9 = arith.truncf %7 : vector<16x64xf32> to vector<16x64xbf16>
    %10 = arith.addf %8, %9 : vector<16x64xbf16>
    %c0_8 = arith.constant 0 : index
    %c0_9 = arith.constant 0 : index
    %11 = vector.load %arg6[%c0_8, %c0_9] : memref<64x128xbf16, #tpu.memory_space<vmem>>, vector<64x128xbf16>
    %cst_10 = arith.constant dense<0.000000e+00> : vector<16x128xf32>
    %12 = tpu.matmul %10, %11, %cst_10 {dimension_numbers = #tpu.dot_dimension_numbers<[1], [0], [0], [1], [0, 0, 1, 1], [], []>} : vector<16x64xbf16>, vector<64x128xbf16>, vector<16x128xf32> -> vector<16x128xf32>
    %c0_11 = arith.constant 0 : index
    %c0_12 = arith.constant 0 : index
    %13 = vector.load %arg7[%c0_11, %c0_12] : memref<1x128xf32, #tpu.memory_space<vmem>>, vector<1x128xf32>
    %14 = vector.broadcast %13 : vector<1x128xf32> to vector<16x128xf32>
    %15 = arith.addf %12, %14 : vector<16x128xf32>
    %16 = vector.extract_strided_slice %15 {offsets = [0, 0], sizes = [16, 32], strides = [1, 1]} : vector<16x128xf32> to vector<16x32xf32>
    %17 = arith.negf %16 : vector<16x32xf32>
    %18 = math.exp %17 : vector<16x32xf32>
    %cst_13 = arith.constant 1.000000e+00 : f32
    %19 = vector.broadcast %cst_13 : f32 to vector<16x32xf32>
    %20 = arith.addf %19, %18 : vector<16x32xf32>
    %21 = arith.divf %19, %20 : vector<16x32xf32>
    %22 = vector.extract_strided_slice %15 {offsets = [0, 32], sizes = [16, 32], strides = [1, 1]} : vector<16x128xf32> to vector<16x32xf32>
    %23 = arith.negf %22 : vector<16x32xf32>
    %24 = math.exp %23 : vector<16x32xf32>
    %cst_14 = arith.constant 1.000000e+00 : f32
    %25 = vector.broadcast %cst_14 : f32 to vector<16x32xf32>
    %26 = arith.addf %25, %24 : vector<16x32xf32>
    %27 = arith.divf %25, %26 : vector<16x32xf32>
    %28 = vector.extract_strided_slice %15 {offsets = [0, 64], sizes = [16, 32], strides = [1, 1]} : vector<16x128xf32> to vector<16x32xf32>
    %29 = vector.extract_strided_slice %15 {offsets = [0, 96], sizes = [16, 32], strides = [1, 1]} : vector<16x128xf32> to vector<16x32xf32>
    %30 = arith.mulf %21, %29 : vector<16x32xf32>
    %31 = arith.addf %28, %30 : vector<16x32xf32>
    %32 = math.tanh %31 : vector<16x32xf32>
    %cst_15 = arith.constant 1.000000e+00 : f32
    %33 = vector.broadcast %cst_15 : f32 to vector<16x32xf32>
    %34 = arith.subf %33, %27 : vector<16x32xf32>
    %35 = arith.mulf %34, %32 : vector<16x32xf32>
    %c0_16 = arith.constant 0 : index
    %c0_17 = arith.constant 0 : index
    %36 = vector.load %arg3[%c0_16, %c0_17] : memref<16x32xf32, #tpu.memory_space<vmem>>, vector<16x32xf32>
    %37 = arith.mulf %27, %36 : vector<16x32xf32>
    %38 = arith.addf %35, %37 : vector<16x32xf32>
    %c0_18 = arith.constant 0 : index
    %c0_19 = arith.constant 0 : index
    %39 = vector.load %arg8[%c0_18, %c0_19] : memref<16x32xf32, #tpu.memory_space<vmem>>, vector<16x32xf32>
    tpu.vector_store %arg8[%c0_18, %c0_19], %38 {strides = array<i32>} : memref<16x32xf32, #tpu.memory_space<vmem>>, vector<16x32xf32>,
    return
  }
  func.func @transform_0(%arg0: i32) -> (i32, i32) {
    %c0_i32 = arith.constant 0 : i32
    %c0_i32_0 = arith.constant 0 : i32
    return %arg0, %c0_i32 : i32, i32
  }
  func.func @transform_1(%arg0: i32) -> (i32, i32) {
    %c0_i32 = arith.constant 0 : i32
    %c0_i32_0 = arith.constant 0 : i32
    return %arg0, %c0_i32 : i32, i32
  }
  func.func @transform_2(%arg0: i32) -> (i32, i32) {
    %c0_i32 = arith.constant 0 : i32
    %c0_i32_0 = arith.constant 0 : i32
    return %arg0, %c0_i32 : i32, i32
  }
  func.func @transform_3(%arg0: i32) -> (i32, i32) {
    %c0_i32 = arith.constant 0 : i32
    %c0_i32_0 = arith.constant 0 : i32
    %c0_i32_1 = arith.constant 0 : i32
    return %c0_i32, %c0_i32_0 : i32, i32
  }
  func.func @transform_4(%arg0: i32) -> (i32, i32) {
    %c0_i32 = arith.constant 0 : i32
    %c0_i32_0 = arith.constant 0 : i32
    %c0_i32_1 = arith.constant 0 : i32
    return %c0_i32, %c0_i32_0 : i32, i32
  }
  func.func @transform_5(%arg0: i32) -> (i32, i32) {
    %c0_i32 = arith.constant 0 : i32
    %c0_i32_0 = arith.constant 0 : i32
    %c0_i32_1 = arith.constant 0 : i32
    return %c0_i32, %c0_i32_0 : i32, i32
  }
  func.func @transform_6(%arg0: i32) -> (i32, i32) {
    %c0_i32 = arith.constant 0 : i32
    %c0_i32_0 = arith.constant 0 : i32
    %c0_i32_1 = arith.constant 0 : i32
    return %c0_i32, %c0_i32_0 : i32, i32
  }
  func.func @transform_7(%arg0: i32) -> (i32, i32) {
    %c0_i32 = arith.constant 0 : i32
    %c0_i32_0 = arith.constant 0 : i32
    return %arg0, %c0_i32 : i32, i32
  }
}

</mosaic_0001>

<bundles_post_ra>
// kernel: char_encoder_rnn_forward_batched.1
= control target key start
LH: loop header
LB: loop body
LE: loop exit
PB: predicated region body
PF: predicated region fallthrough
CT: control target
= control target key end

     0   :  { %s1272_s24 = smov 0   ;;  %s1397_s0 = inlined_call_operand.vmem [shape: bf16[256,80], index: 0, kind: input, shape index: {}]   ;;  %s1398_s1 = inlined_call_operand.vmem [shape: bf16[32,64], index: 1, kind: input, shape index: {}]   ;;  %s1399_s2 = inlined_call_operand.vmem [shape: f32[32,32], index: 2, kind: input, shape index: {}]   ;;  %s1400_s3 = inlined_call_operand.vmem [shape: bf16[80,64], index: 3, kind: input, shape index: {}]   ;;  %s1401_s4 = inlined_call_operand.vmem [shape: f32[1,64], index: 4, kind: input, shape index: {}]   ;;  %s1402_s5 = inlined_call_operand.vmem [shape: bf16[64,128], index: 5, kind: input, shape index: {}]   ;;  %s1403_s6 = inlined_call_operand.vmem [shape: f32[1,128], index: 6, kind: input, shape index: {}]   ;;  %s1404_s7 = inlined_call_operand.vmem [shape: f32[32,32], index: 7, kind: output, shape index: {}]  }
   0x1 LB: > { %s1043_s25 = sadd.s32 4294967295, %s1225_s24   ;;  %p1047_p0 = scmp.ge.s32.totalorder %s1225_s24, 1  ;;  %s1225_s24 = sphi %s1272_s24, %s17_s24  }
   0x2   : > { %p260_p1 = scmp.lt.s32.totalorder %s1225_s24, 3 }
   0x4   : > { %p261_p2 = pnand %p1047_p0, %p260_p1 }
   0x5   : > { %v1190_v0 = vld [vmem:[%s1400_s3] sm:$0xff] (!%p261_p2)   ;;  %s1048_s28 = sshll.u32 (!%p261_p2), %s1043_s25, 4  ;;  %v1191_v1 = vld [vmem:[%s1400_s3 + $0x8] sm:$0xff] (!%p261_p2)   ;;  %v1192_v2 = vld [vmem:[%s1400_s3 + $0x10] sm:$0xff] (!%p261_p2)   ;;  %vm423_vm0 = vcmask (!%p261_p2), 654336   ;;  %v1227_v14 = vmov (!%p261_p2), 0.0  }
   0x6   : > { %264 = sbr.rel (%p261_p2) target bundleno = 1002 (0x3ea), region = 48  ;;  %p303_p3 = scmp.lt.s32.totalorder (!%p261_p2), %s1048_s28, 31  ;;  %1139 = vmatprep.subr.bf16.mxu0 (!%p261_p2), %v1190_v0  ;;  %v1193_v4 = vld [vmem:[%s1400_s3 + $0x18] sm:$0xff] (!%p261_p2)   ;;  %v1194_v5 = vld [vmem:[%s1400_s3 + $0x20] sm:$0xff] (!%p261_p2)   ;;  %1165 = vmatprep.subr.bf16.mxu1 (!%p261_p2), %v1227_v14  ;;  %v1204_v15 = vld [vmem:[%s1402_s5 + $0x8] sm:$0xff] (!%p261_p2)   ;;  %vm1228_vm1 = vmmov (!%p261_p2), 0  }
   0x7   : > { %1140 = vmatpush3.bf16.msra.mxu0 (!%p261_p2), %v1190_v0  ;;  %v1203_v13 = vld [vmem:[%s1402_s5] sm:$0xff] (!%p261_p2)   ;;  %v1205_v16 = vld [vmem:[%s1402_s5 + $0x10] sm:$0xff] (!%p261_p2)   ;;  %1173 = vmatprep.mubr.msk.bf16.mxu1 (!%p261_p2), %vm1228_vm1, %v1227_v14  ;;  %v1206_v17 = vld [vmem:[%s1402_s5 + $0x18] sm:$0xff] (!%p261_p2)   ;;  %vm545_vm2 = vcmask (!%p261_p2), 523264   ;;  %vm764_vm3 = vcmask (!%p261_p2), 1041409   ;;  %vm767_vm4 = vcmask (!%p261_p2), 1042434  }
   0x8   : > { %1141 = vmatprep.subr.bf16.mxu0 (!%p261_p2), %v1191_v1  ;;  %1166 = vmatpush3.bf16.msra.mxu1 (!%p261_p2), %v1203_v13  ;;  %v1329_v48 = vld [vmem:[%s1401_s4] ss:$0 sm:$0xff] (!%p261_p2)  ;;  %vm770_vm5 = vcmask (!%p261_p2), 1043459   ;;  %vm773_vm6 = vcmask (!%p261_p2), 1044484   ;;  %vm776_vm7 = vcmask (!%p261_p2), 1045509   ;;  %vm779_vm8 = vcmask (!%p261_p2), 1046534  }
   0x9   : > { %1167 = vmatprep.subr.bf16.mxu1 (!%p261_p2), %v1227_v14  ;;  %vm782_vm9 = vcmask (!%p261_p2), 1047559   ;;  %s1050_s30 = sshll.u32 (!%p261_p2), %s1043_s25, 1  ;;  %s1230_s15 = smov (!%p261_p2), 64   ;;  %vm960_vm10 = vcmask (!%p261_p2), 261120  }
   0xa   : > { %p309_p4 = scmp.lt.s32.totalorder (!%p261_p2), %s1050_s30, 3  ;;  %s1231_s19 = smov (!%p261_p2), 96  }
   0xb   : > { %1142 = vmatpush3.bf16.msra.mxu0 (!%p261_p2), %v1191_v1 }
   0xc   : > { %1143 = vmatprep.subr.bf16.mxu0 (!%p261_p2), %v1192_v2  ;;  %1168 = vmatpush3.bf16.msra.mxu1 (!%p261_p2), %v1204_v15 }
   0xd   : > { %s1406_s28 = smov (!%p303_p3, %s1048_s28), 31  ;;  %1169 = vmatprep.subr.bf16.mxu1 %v1227_v14  ;;  %s1408_s30 = smov (!%p309_p4, %s1050_s30), 3 }
   0xe   : > { %s1049_s10 = sshll.u32 %s1406_s28, 2  ;;  %s1051_s25 = sshll.u32 %s1408_s30, 2 }
   0xf   : > { %s306_s13 = scalar_lea.vmem %s1397_s0, %s1049_s10  ;;  %1144 = vmatpush3.bf16.msra.mxu0 %v1192_v2  ;;  %s312_s10 = scalar_lea.vmem %s1398_s1, %s1051_s25 }
  0x10   : > { %v1195_v3 = vld [vmem:[%s306_s13] sm:$0xff]   ;;  %1145 = vmatprep.subr.bf16.mxu0 %v1193_v4  ;;  %v1196_v6 = vld [vmem:[%s306_s13 + $0x8] sm:$0xff]   ;;  %v1197_v7 = vld [vmem:[%s306_s13 + $0x10] sm:$0xff]   ;;  %1170 = vmatpush3.bf16.msra.mxu1 %v1205_v16  ;;  %s1053_s14 = sshll.u32 %s1408_s30, 3 }
  0x11   : > { %1149 = vmatprep.mubr.msk.bf16.mxu0 %vm423_vm0, %v1195_v3  ;;  %v1198_v8 = vld [vmem:[%s306_s13 + $0x18] sm:$0xff]   ;;  %v1199_v9 = vld [vmem:[%s306_s13 + $0x20] sm:$0xff]   ;;  %v1200_v10 = vld [vmem:[%s306_s13 + $0x28] sm:$0xff]   ;;  %1171 = vmatprep.subr.bf16.mxu1 %v1227_v14  ;;  %s318_s18 = scalar_lea.vmem %s1399_s2, %s1053_s14  ;;  %s324_s22 = scalar_lea.vmem %s1404_s7, %s1053_s14 }
  0x12   : > { %v1201_v11 = vld [vmem:[%s306_s13 + $0x30] sm:$0xff]   ;;  %v1202_v12 = vld [vmem:[%s306_s13 + $0x38] sm:$0xff]   ;;  %s1229_s13 = smov 32  }
  0x13   : > { %1146 = vmatpush3.bf16.msra.mxu0 %v1193_v4 }
  0x14   : > { %1147 = vmatprep.subr.bf16.mxu0 %v1194_v5  ;;  %1172 = vmatpush3.bf16.msra.mxu1 %v1206_v17 }
  0x17   : > { %1148 = vmatpush3.bf16.msra.mxu0 %v1194_v5 }
  0x1a   : > { %1150 = vmatmul.mubr.msk.bf16.vlgmr.msra.gmra.mrb[0].mxu0 %vm423_vm0, %v1196_v6 }
  0x1b   : > { %1153 = vmatprep.mubr.msk.bf16.mxu0 %vm423_vm0, %v1197_v7 }
  0x22   : > { %1154 = vmatmul.mubr.msk.bf16.gmra.mrb[4].mxu0 %vm423_vm0, %v1198_v8 }
  0x23   : > { %1157 = vmatprep.mubr.msk.bf16.mxu0 %vm423_vm0, %v1199_v9 }
  0x2a   : > { %1158 = vmatmul.mubr.msk.bf16.gmra.mrb[8].mxu0 %vm423_vm0, %v1200_v10 }
  0x2b   : > { %1161 = vmatprep.mubr.msk.bf16.mxu0 %vm423_vm0, %v1201_v11 }
  0x32   : > { %1162 = vmatmul.mubr.msk.bf16.gmra.mrb[12].mxu0 %vm423_vm0, %v1202_v12 }
  0xed   : > { %v1151_v18 = vpop.f32.mrb[0].mxu0 }
  0xee   : > { %v560_v19 = vsel %vm545_vm2, %v1151_v18, -inf  ;;  %v482_v20 = vpop.f32.mrb[1].mxu0 }
  0xef   : > { %v561_v21 = vrot.slane %v560_v19, 4  ;;  %v546_v22 = vsel %vm545_vm2, %v482_v20, -inf  ;;  %v1152_v23 = vpop.f32.mrb[2].mxu0 }
  0xf0   : > { %v547_v24 = vrot.slane %v546_v22, 4  ;;  %v567_v25 = vsel %vm545_vm2, %v1152_v23, -inf  ;;  %v485_v26 = vpop.f32.mrb[3].mxu0 }
  0xf1   : > { %v562_v27 = vmax.f32 %v560_v19, %v561_v21  ;;  %v568_v28 = vrot.slane %v567_v25, 4  ;;  %v553_v29 = vsel %vm545_vm2, %v485_v26, -inf }
  0xf2   : > { %v548_v30 = vmax.f32 %v546_v22, %v547_v24  ;;  %v554_v31 = vrot.slane %v553_v29, 4 }
  0xf3   : > { %v563_v32 = vrot.slane %v562_v27, 2  ;;  %v569_v33 = vmax.f32 %v567_v25, %v568_v28 }
  0xf4   : > { %v549_v34 = vrot.slane %v548_v30, 2  ;;  %v555_v35 = vmax.f32 %v553_v29, %v554_v31 }
  0xf5   : > { %v564_v36 = vmax.f32 %v562_v27, %v563_v32  ;;  %v570_v37 = vrot.slane %v569_v33, 2  ;;  %v1155_v38 = vpop.f32.mrb[4].mxu0 }
  0xf6   : > { %v550_v39 = vmax.f32 %v548_v30, %v549_v34  ;;  %v556_v40 = vrot.slane %v555_v35, 2  ;;  %v588_v41 = vsel %vm545_vm2, %v1155_v38, -inf  ;;  %v498_v42 = vpop.f32.mrb[5].mxu0 }
  0xf7   : > { %v565_v43 = vrot.slane %v564_v36, 1  ;;  %v571_v44 = vmax.f32 %v569_v33, %v570_v37  ;;  %v589_v45 = vrot.slane %v588_v41, 4  ;;  %v574_v46 = vsel %vm545_vm2, %v498_v42, -inf  ;;  %v1156_v47 = vpop.f32.mrb[6].mxu0 }
  0xf8   : > { %v551_v49 = vrot.slane %v550_v39, 1  ;;  %v557_v50 = vmax.f32 %v555_v35, %v556_v40  ;;  %v575_v51 = vrot.slane %v574_v46, 4  ;;  %v595_v52 = vsel %vm545_vm2, %v1156_v47, -inf  ;;  %v501_v53 = vpop.f32.mrb[7].mxu0 }
  0xf9   : > { %v566_v54 = vmax.f32 %v564_v36, %v565_v43  ;;  %v572_v55 = vrot.slane %v571_v44, 1  ;;  %v590_v56 = vmax.f32 %v588_v41, %v589_v45  ;;  %v596_v57 = vrot.slane %v595_v52, 4 }
  0xfa   : > { %v552_v58 = vmax.f32 %v550_v39, %v551_v49  ;;  %v558_v59 = vrot.slane %v557_v50, 1  ;;  %v576_v60 = vmax.f32 %v574_v46, %v575_v51  ;;  %v581_v61 = vsel %vm545_vm2, %v501_v53, -inf }
  0xfb   : > { %v667_v62 = vadd.f32 %v1329_v48, %v566_v54  ;;  %v573_v63 = vmax.f32 %v571_v44, %v572_v55  ;;  %v591_v0 = vrot.slane %v590_v56, 2  ;;  %v597_v1 = vmax.f32 %v595_v52, %v596_v57 }
  0xfc   : > { %v665_v2 = vadd.f32 %v1329_v48, %v552_v58  ;;  %v559_v3 = vmax.f32 %v557_v50, %v558_v59  ;;  %v577_v4 = vrot.slane %v576_v60, 2  ;;  %v582_v5 = vrot.slane %v581_v61, 4 }
  0xfd   : > { %v1107_v6 = vpack.c.bf16 %v667_v62, %v667_v62  ;;  %v668_v7 = vadd.f32 %v1329_v48, %v573_v63  ;;  %v592_v8 = vmax.f32 %v590_v56, %v591_v0  ;;  %v598_v9 = vrot.slane %v597_v1, 2  ;;  %v1159_v10 = vpop.f32.mrb[8].mxu0 }
  0xfe   : > { %v1105_v11 = vpack.c.bf16 %v665_v2, %v665_v2  ;;  %v666_v12 = vadd.f32 %v1329_v48, %v559_v3  ;;  %v578_v13 = vmax.f32 %v576_v60, %v577_v4  ;;  %v583_v14 = vmax.f32 %v581_v61, %v582_v5  ;;  %v514_v15 = vpop.f32.mrb[9].mxu0 }
  0xff   : > { %v749_v16 = vunpack.c.l.b16 %v1107_v6  ;;  %v1108_v17 = vpack.c.bf16 %v668_v7, %v668_v7  ;;  %v593_v18 = vrot.slane %v592_v8, 1  ;;  %v599_v19 = vmax.f32 %v597_v1, %v598_v9  ;;  %v1160_v20 = vpop.f32.mrb[10].mxu0 }
 0x100   : > { %v1106_v21 = vpack.c.bf16 %v666_v12, %v666_v12  ;;  %v579_v22 = vrot.slane %v578_v13, 1  ;;  %v584_v23 = vrot.slane %v583_v14, 2  ;;  %v517_v24 = vpop.f32.mrb[11].mxu0  ;;  %v616_v31 = vsel %vm545_vm2, %v1159_v10, -inf }
 0x101   : > { %v750_v25 = vunpack.c.l.b16 %v1108_v17  ;;  %v594_v26 = vmax.f32 %v592_v8, %v593_v18  ;;  %v600_v27 = vrot.slane %v599_v19, 1  ;;  %v766_v32 = vrot.slane %v749_v16, 6 }
 0x102   : > { %v748_v28 = vunpack.c.l.b16 %v1106_v21  ;;  %v580_v29 = vmax.f32 %v578_v13, %v579_v22  ;;  %v585_v30 = vmax.f32 %v583_v14, %v584_v23  ;;  %v747_v33 = vunpack.c.l.b16 %v1105_v11 }
 0x103   : > { %v601_v34 = vmax.f32 %v599_v19, %v600_v27  ;;  %v617_v35 = vrot.slane %v616_v31, 4  ;;  %v602_v39 = vsel %vm545_vm2, %v514_v15, -inf  ;;  %v769_v40 = vrot.slane %v750_v25, 5 }
 0x104   : > { %v763_v36 = vrot.slane %v748_v28, 7  ;;  %v669_v37 = vadd.f32 %v1329_v48, %v580_v29  ;;  %v586_v38 = vrot.slane %v585_v30, 1  ;;  %v671_v41 = vadd.f32 %v1329_v48, %v594_v26 }
 0x105   : > { %v618_v42 = vmax.f32 %v616_v31, %v617_v35  ;;  %v603_v43 = vrot.slane %v602_v39, 4  ;;  %v1163_v44 = vpop.f32.mrb[12].mxu0  ;;  %v623_v49 = vsel %vm545_vm2, %v1160_v20, -inf  ;;  %v672_v52 = vadd.f32 %v1329_v48, %v601_v34 }
 0x106   : > { %v765_v45 = vsel %vm764_vm3, %v763_v36, %v747_v33  ;;  %v1109_v46 = vpack.c.bf16 %v669_v37, %v669_v37  ;;  %v587_v47 = vmax.f32 %v585_v30, %v586_v38  ;;  %v530_v50 = vpop.f32.mrb[13].mxu0  ;;  %v1111_v60 = vpack.c.bf16 %v671_v41, %v671_v41 }
 0x107   : > { %v768_v51 = vsel %vm767_vm4, %v766_v32, %v765_v45  ;;  %v619_v53 = vrot.slane %v618_v42, 2  ;;  %v1164_v54 = vpop.f32.mrb[14].mxu0  ;;  %v604_v58 = vmax.f32 %v602_v39, %v603_v43  ;;  %v624_v62 = vrot.slane %v623_v49, 4 }
 0x108   : > { %v751_v55 = vunpack.c.l.b16 %v1109_v46  ;;  %v771_v56 = vsel %vm770_vm5, %v769_v40, %v768_v51  ;;  %v670_v57 = vadd.f32 %v1329_v48, %v587_v47  ;;  %v533_v59 = vpop.f32.mrb[15].mxu0  ;;  %v609_v2 = vsel %vm545_vm2, %v517_v24, -inf }
 0x109   : > { %v620_v61 = vmax.f32 %v618_v42, %v619_v53  ;;  %v605_v1 = vrot.slane %v604_v58, 2  ;;  %v1112_v3 = vpack.c.bf16 %v672_v52, %v672_v52  ;;  %v625_v5 = vmax.f32 %v623_v49, %v624_v62 }
 0x10a   : > { %v772_v63 = vrot.slane %v751_v55, 4  ;;  %v1110_v0 = vpack.c.bf16 %v670_v57, %v670_v57  ;;  %v610_v6 = vrot.slane %v609_v2, 4  ;;  %v644_v10 = vsel %vm545_vm2, %v1163_v44, -inf }
 0x10b   : > { %v621_v4 = vrot.slane %v620_v61, 1  ;;  %v606_v9 = vmax.f32 %v604_v58, %v605_v1  ;;  %v626_v12 = vrot.slane %v625_v5, 2  ;;  %v645_v14 = vrot.slane %v644_v10, 4 }
 0x10c   : > { %v774_v7 = vsel %vm773_vm6, %v772_v63, %v771_v56  ;;  %v752_v8 = vunpack.c.l.b16 %v1110_v0  ;;  %v611_v13 = vmax.f32 %v609_v2, %v610_v6  ;;  %v630_v17 = vsel %vm545_vm2, %v530_v50, -inf }
 0x10d   : > { %v622_v11 = vmax.f32 %v620_v61, %v621_v4  ;;  %v607_v16 = vrot.slane %v606_v9, 1  ;;  %v651_v18 = vsel %vm545_vm2, %v1164_v54, -inf  ;;  %v753_v19 = vunpack.c.l.b16 %v1111_v60 }
 0x10e   : > { %v775_v15 = vrot.slane %v752_v8, 3  ;;  %v627_v20 = vmax.f32 %v625_v5, %v626_v12  ;;  %v612_v21 = vrot.slane %v611_v13, 2  ;;  %v646_v22 = vmax.f32 %v644_v10, %v645_v14 }
 0x10f   : > { %v754_v23 = vunpack.c.l.b16 %v1112_v3  ;;  %v631_v25 = vrot.slane %v630_v17, 4  ;;  %v652_v26 = vrot.slane %v651_v18, 4  ;;  %v608_v27 = vmax.f32 %v606_v9, %v607_v16 }
 0x110   : > { %v777_v24 = vsel %vm776_vm7, %v775_v15, %v774_v7  ;;  %v628_v28 = vrot.slane %v627_v20, 1  ;;  %v613_v29 = vmax.f32 %v611_v13, %v612_v21  ;;  %v647_v30 = vrot.slane %v646_v22, 2 }
 0x111   : > { %v675_v31 = vadd.f32 %v1329_v48, %v622_v11  ;;  %v632_v32 = vmax.f32 %v630_v17, %v631_v25  ;;  %v653_v33 = vmax.f32 %v651_v18, %v652_v26  ;;  %v637_v34 = vsel %vm545_vm2, %v533_v59, -inf }
 0x112   : > { %v778_v35 = vrot.slane %v753_v19, 2  ;;  %v629_v36 = vmax.f32 %v627_v20, %v628_v28  ;;  %v614_v37 = vrot.slane %v613_v29, 1  ;;  %v648_v38 = vmax.f32 %v646_v22, %v647_v30 }
 0x113   : > { %v781_v39 = vrot.slane %v754_v23, 1  ;;  %v633_v40 = vrot.slane %v632_v32, 2  ;;  %v654_v41 = vrot.slane %v653_v33, 2  ;;  %v638_v42 = vrot.slane %v637_v34, 4 }
 0x114   : > { %v673_v43 = vadd.f32 %v1329_v48, %v608_v27  ;;  %v676_v44 = vadd.f32 %v1329_v48, %v629_v36  ;;  %v615_v45 = vmax.f32 %v613_v29, %v614_v37  ;;  %v649_v46 = vrot.slane %v648_v38, 1 }
 0x115   : > { %v1115_v47 = vpack.c.bf16 %v675_v31, %v675_v31  ;;  %v634_v49 = vmax.f32 %v632_v32, %v633_v40  ;;  %v655_v50 = vmax.f32 %v653_v33, %v654_v41  ;;  %v639_v51 = vmax.f32 %v637_v34, %v638_v42  ;;  %v681_v32 = vld [vmem:[%s312_s10] sm:$0xf]  ;;  %v682_v33 = vld [vmem:[%s312_s10 + $0x4] sm:$0xf] }
 0x116   : > { %v1116_v52 = vpack.c.bf16 %v676_v44, %v676_v44  ;;  %v674_v53 = vadd.f32 %v1329_v48, %v615_v45  ;;  %v650_v54 = vmax.f32 %v648_v38, %v649_v46  ;;  %v780_v55 = vsel %vm779_vm8, %v778_v35, %v777_v24 }
 0x117   : > { %v635_v56 = vrot.slane %v634_v49, 1  ;;  %v656_v57 = vrot.slane %v655_v50, 1  ;;  %v640_v58 = vrot.slane %v639_v51, 2  ;;  %v783_v59 = vsel %vm782_vm9, %v781_v39, %v780_v55  ;;  %v1094_v39 = vld [vmem:[%s1403_s6] ss:$0 sm:$0xff] }
 0x118   : > { %v1113_v60 = vpack.c.bf16 %v673_v43, %v673_v43  ;;  %v1114_v61 = vpack.c.bf16 %v674_v53, %v674_v53  ;;  %v757_v62 = vunpack.c.l.b16 %v1115_v47  ;;  %v758_v2 = vunpack.c.l.b16 %v1116_v52 }
 0x119   : > { %v636_v63 = vmax.f32 %v634_v49, %v635_v56  ;;  %v657_v0 = vmax.f32 %v655_v50, %v656_v57  ;;  %v641_v1 = vmax.f32 %v639_v51, %v640_v58  ;;  %v679_v4 = vadd.f32 %v1329_v48, %v650_v54 }
 0x11a   : > { %v756_v3 = vunpack.c.l.b16 %v1114_v61  ;;  %v755_v8 = vunpack.c.l.b16 %v1113_v60  ;;  %v786_v10 = vrot.slane %v757_v62, 6  ;;  %v788_v13 = vrot.slane %v758_v2, 5  ;;  %v939_v60 = vld [vmem:[%s318_s18 + $0x8] sm:$0xff] }
 0x11b   : > { %v677_v5 = vadd.f32 %v1329_v48, %v636_v63  ;;  %v680_v6 = vadd.f32 %v1329_v48, %v657_v0  ;;  %v642_v7 = vrot.slane %v641_v1, 1  ;;  %v1119_v15 = vpack.c.bf16 %v679_v4, %v679_v4 }
 0x11c   : > { %v784_v9 = vrot.slane %v756_v3, 7  ;;  %v798_v31 = vpack.c.b16 %v783_v59, %v783_v59  ;;  %v938_v59 = vld [vmem:[%s318_s18] sm:$0xff] }
 0x11d   : > { %v1117_v11 = vpack.c.bf16 %v677_v5, %v677_v5  ;;  %v643_v12 = vmax.f32 %v641_v1, %v642_v7  ;;  %v1120_v18 = vpack.c.bf16 %v680_v6, %v680_v6  ;;  %v761_v23 = vunpack.c.l.b16 %v1119_v15 }
 0x11e   : > { %v785_v14 = vsel %vm764_vm3, %v784_v9, %v755_v8  ;;  %v802_v36 = vadd.bf16 %v798_v31, %v681_v32 }
 0x11f   : > { %v787_v16 = vsel %vm767_vm4, %v786_v10, %v785_v14  ;;  %v759_v17 = vunpack.c.l.b16 %v1117_v11  ;;  %v678_v19 = vadd.f32 %v1329_v48, %v643_v12  ;;  %v762_v25 = vunpack.c.l.b16 %v1120_v18 }
 0x120   : > { %v789_v20 = vsel %vm770_vm5, %v788_v13, %v787_v16  ;;  %v794_v28 = vrot.slane %v761_v23, 2 }
 0x121   : > { %v790_v21 = vrot.slane %v759_v17, 4  ;;  %v1118_v22 = vpack.c.bf16 %v678_v19, %v678_v19  ;;  %v796_v48 = vrot.slane %v762_v25, 1 }
 0x123   : > { %v791_v24 = vsel %vm773_vm6, %v790_v21, %v789_v20  ;;  %v760_v26 = vunpack.c.l.b16 %v1118_v22 }
 0x125   : > { %v792_v27 = vrot.slane %v760_v26, 3 }
 0x127   : > { %v793_v29 = vsel %vm776_vm7, %v792_v27, %v791_v24 }
 0x128   : > { %v795_v30 = vsel %vm779_vm8, %v794_v28, %v793_v29 }
 0x129   : > { %v797_v34 = vsel %vm782_vm9, %v796_v48, %v795_v30 }
 0x12a   : > { %v799_v35 = vpack.c.b16 %v797_v34, %v797_v34 }
 0x12c   : > { %v803_v37 = vadd.bf16 %v799_v35, %v682_v33 }
 0x12e   : > { %v1095_v38 = vcombine.low %v802_v36, %v803_v37 }
 0x130   : > { %1174 = vmatmul.mubr.msk.bf16.vlgmr.msra.gmra.mrb[0].mxu1 %vm545_vm2, %v1095_v38 }
 0x203   : > { %v885_v40 = vpop.f32.mrb[0].mxu1 }
 0x204   : > { %v886_v41 = vadd.f32 %v1094_v39, %v885_v40  ;;  %v1175_v42 = vpop.f32.mrb[1].mxu1 }
 0x205   : > { %v888_v43 = vpop.f32.mrb[2].mxu1 }
 0x206   : > { %906 = vrot.lane.b32.xlu0 %v886_v41, %s1229_s13  ;;  %v1176_v44 = vpop.f32.mrb[3].mxu1  ;;  %v889_v45 = vadd.f32 %v1094_v39, %v888_v43  ;;  %v1101_v46 = vmul.f32 -1.442695, %v886_v41 }
 0x208   : > { %1207 = vpow2.f32 %v1101_v46  ;;  %v1102_v47 = vmul.f32 -1.442695, %v889_v45 }
 0x20a   : > { %908 = vrot.lane.b32.xlu0 %v889_v45, %s1229_s13  ;;  %1209 = vpow2.f32 %v1102_v47 }
 0x212   : > { %v1208_v49 = vpop.eup %1207 }
 0x213   : > { %v898_v50 = vadd.f32 1.0, %v1208_v49 }
 0x214   : > { %v1210_v51 = vpop.eup %1209 }
 0x215   : > { %1211 = vrcp.f32 %v898_v50  ;;  %v899_v52 = vadd.f32 1.0, %v1210_v51 }
 0x217   : > { %1213 = vrcp.f32 %v899_v52 }
 0x21f   : > { %v1212_v53 = vpop.eup %1211 }
 0x220   : > { %v926_v4 = vsub.f32 1.0, %v1212_v53 }
 0x221   : > { %v1214_v56 = vpop.eup %1213 }
 0x222   : > { %v927_v10 = vsub.f32 1.0, %v1214_v56 }
 0x278   : > { %v907_v54 = vpop.permute.xlu0 %906 }
 0x279   : > { %v912_v55 = vmul.f32 %v1212_v53, %v907_v54 }
 0x27b   : > { %916 = vrot.lane.b32.xlu1 %v912_v55, %s1230_s15 }
 0x27c   : > { %v909_v57 = vpop.permute.xlu0 %908 }
 0x27d   : > { %v913_v58 = vmul.f32 %v1214_v56, %v909_v57 }
 0x27f   : > { %918 = vrot.lane.b32.xlu1 %v913_v58, %s1230_s15 }
 0x283   : > { %942 = vrot.lane.b32.xlu1 %v938_v59, %s1229_s13 }
 0x287   : > { %944 = vrot.lane.b32.xlu1 %v939_v60, %s1229_s13 }
 0x2ed   : > { %v917_v61 = vpop.permute.xlu1 %916 }
 0x2ee   : > { %v922_v62 = vadd.f32 %v917_v61, %v886_v41 }
 0x2f0   : > { %1215 = vtanh.f32 %v922_v62 }
 0x2f1   : > { %v919_v63 = vpop.permute.xlu1 %918 }
 0x2f2   : > { %v923_v0 = vadd.f32 %v919_v63, %v889_v45 }
 0x2f4   : > { %1217 = vtanh.f32 %v923_v0 }
 0x2f5   : > { %v943_v3 = vpop.permute.xlu1 %942 }
 0x2f6   : > { %v948_v6 = vmul.f32 %v1212_v53, %v943_v3 }
 0x2f9   : > { %v945_v8 = vpop.permute.xlu1 %944 }
 0x2fa   : > { %v1216_v1 = vpop.eup %1215  ;;  %v949_v12 = vmul.f32 %v1214_v56, %v945_v8 }
 0x2fb   : > { %930 = vrot.lane.b32.xlu0 %v1216_v1, %s1231_s19 }
 0x2fe   : > { %v1218_v2 = vpop.eup %1217 }
 0x2ff   : > { %932 = vrot.lane.b32.xlu0 %v1218_v2, %s1231_s19 }
 0x36d   : > { %v931_v5 = vpop.permute.xlu0 %930 }
 0x36e   : > { %v936_v7 = vmul.f32 %v931_v5, %v926_v4 }
 0x370   : > { %v950_v9 = vadd.f32 %v948_v6, %v936_v7 }
 0x371   : > { %v933_v11 = vpop.permute.xlu0 %932 }
 0x372   : > { %v937_v13 = vmul.f32 %v933_v11, %v927_v10  ;;  %954 = vrot.lane.b32.xlu0 %v950_v9, %s1231_s19 }
 0x374   : > { %v951_v14 = vadd.f32 %v949_v12, %v937_v13 }
 0x376   : > { %956 = vrot.lane.b32.xlu1 %v951_v14, %s1231_s19 }
 0x3e4   : > { %v955_v15 = vpop.permute.xlu0 %954 }
 0x3e5   : > { %961 = vst.msk [vmem:[%s324_s22] sm:$0xff] %vm960_vm10, %v955_v15 }
 0x3e8   : > { %v957_v16 = vpop.permute.xlu1 %956 }
 0x3e9   : > { %962 = vst.msk [vmem:[%s324_s22 + $0x8] sm:$0xff] %vm960_vm10, %v957_v16 }
 0x3ea PF: > { %s17_s24 = sadd.s32 1, %s1225_s24  }
 0x3eb   : > { %p14_p5 = scmp.ge.s32.totalorder %s17_s24, 4  }
 0x3ed   :  { %16 = sbr.rel (!%p14_p5) target bundleno = 1 (0x1), region = 84 }

</bundles_post_ra>
